<compile_context>
chip_gen: v7x
topology: tpu7x:2x2x1
jax: 0.10.0
libtpu: 0.0.40
codegen_flags: <defaults>
</compile_context>

<pallas_src>
import jax
import jax.numpy as jnp
from jax.experimental import pallas as pl
from jax.experimental.pallas import tpu as pltpu

_LANE = 128      # TPU lane width
_SUBLANE = 8     # TPU sublane count
_TC = 8          # time steps integrated per grid chunk


def _round_up(x, m):
    return ((x + m - 1) // m) * m


def _ode_kernel(dt_ref, s0_ref, w1_ref, b1_ref, w2_ref, b2_ref, out_ref, s_ref):
    """Integrates TC Euler steps per grid iteration.

    Grid axis 0 = time-chunk index (sequential / 'arbitrary').

    dt_ref : SMEM (T_pad,)       dt[i] = t[i] - t[i-1]  (dt[0] = 0 -> step 0 emits s0)
    s0_ref : VMEM (Bp, F)        stacked initial state [y0 | y0], zero-padded
    w1_ref : VMEM (F, HP)        block-diag(w1_func, w1_gfunc), zero-padded
    b1_ref : VMEM (1, HP)        [b1_func | b1_gfunc], zero-padded
    w2_ref : VMEM (HP, F)        [[w2f, 0], [w2g, w2g]] (Euler coupling folded in)
    b2_ref : VMEM (1, F)         [b2f + b2g | b2g], zero-padded
    out_ref: VMEM (TC, Bp, F)    this chunk's trajectory block (dense tile stores)
    s_ref  : VMEM (Bp, F)        state carried across grid iterations
    """
    c = pl.program_id(0)
    tc, bp, f = out_ref.shape
    hp = w1_ref.shape[1]

    @pl.when(c == 0)
    def _():
        s_ref[...] = s0_ref[...]

    # Hoist weights / bias broadcasts out of the step loop (loaded once per chunk).
    w1 = w1_ref[...]
    w2 = w2_ref[...]
    b1 = jnp.broadcast_to(b1_ref[...], (bp, hp))
    b2 = jnp.broadcast_to(b2_ref[...], (bp, f))

    s = s_ref[...]                          # s = [y | u] (lane-padded to F)
    base = c * tc
    # Short static unroll (TC steps); large T is handled by the grid, so code
    # size and vreg live ranges stay bounded.
    for j in range(tc):
        dt = dt_ref[base + j]               # scalar from SMEM (dt[0] == 0)
        h = jnp.tanh(jnp.dot(s, w1, preferred_element_type=jnp.float32) + b1)
        # deriv = [func(y) + gfunc(u) | gfunc(u)] (coupling folded into w2/b2)
        deriv = jnp.dot(h, w2, preferred_element_type=jnp.float32) + b2
        s = s + dt * deriv
        out_ref[j] = s                      # dense (Bp, F) tile store
    s_ref[...] = s


def fuse_params(params):
    """Build the fused, lane-padded weights ONCE (cache and reuse across calls)."""
    w1f, b1f, w2f, b2f, w1g, b1g, w2g, b2g = params
    D, H = w1f.shape
    F = _round_up(2 * D, _LANE)
    HP = _round_up(2 * H, _LANE)

    # Layer 1 on stacked state s = [y | u]:  s @ W1 + b1 = [y@w1f+b1f | u@w1g+b1g]
    W1 = jnp.zeros((F, HP), jnp.float32)
    W1 = W1.at[:D, :H].set(w1f).at[D:2 * D, H:2 * H].set(w1g)
    b1 = jnp.zeros((1, HP), jnp.float32)
    b1 = b1.at[:, :H].set(b1f).at[:, H:2 * H].set(b1g)

    # Layer 2 with the Euler coupling folded in:
    #   deriv([y|u]) = [func(y)+gfunc(u) | gfunc(u)]
    #                = [h_f|h_g] @ [[w2f, 0], [w2g, w2g]] + [b2f+b2g | b2g]
    W2 = jnp.zeros((HP, F), jnp.float32)
    W2 = W2.at[:H, :D].set(w2f).at[H:2 * H, :D].set(w2g).at[H:2 * H, D:2 * D].set(w2g)
    b2 = jnp.zeros((1, F), jnp.float32)
    b2 = b2.at[:, :D].set(b2f + b2g).at[:, D:2 * D].set(b2g)
    return W1, b1, W2, b2


def _forward_impl(y0, t, fused, input_dim):
    """CSNeuralODE.forward(y0, t) -> (B, T, 2), using pre-fused weights."""
    W1, b1, W2, b2 = fused
    B, D = y0.shape
    T = t.shape[0]
    F = W2.shape[1]

    B_pad = _round_up(B, _SUBLANE)
    n_chunks = -(-T // _TC)
    T_pad = n_chunks * _TC

    # dt[i] = t[i] - t[i-1]; dt[0] = 0 (step 0 just re-emits s0); padded steps
    # beyond T also get dt = 0 so the state is unchanged there.
    dt = jnp.zeros((T_pad,), jnp.float32)
    dt = dt.at[1:T].set((t[1:] - t[:-1]).astype(jnp.float32))

    # Stacked initial state [y0 | y0], zero-padded to (B_pad, F).
    y0f = y0.astype(jnp.float32)
    s0 = jnp.zeros((B_pad, F), jnp.float32)
    s0 = s0.at[:B, :D].set(y0f).at[:B, D:2 * D].set(y0f)

    vmem = pltpu.MemorySpace.VMEM
    smem = pltpu.MemorySpace.SMEM
    sol = pl.pallas_call(
        _ode_kernel,
        out_shape=jax.ShapeDtypeStruct((T_pad, B_pad, F), jnp.float32),
        grid=(n_chunks,),
        in_specs=[
            pl.BlockSpec(memory_space=smem),   # dt (T_pad,)
            pl.BlockSpec(memory_space=vmem),   # s0
            pl.BlockSpec(memory_space=vmem),   # W1
            pl.BlockSpec(memory_space=vmem),   # b1
            pl.BlockSpec(memory_space=vmem),   # W2
            pl.BlockSpec(memory_space=vmem),   # b2
        ],
        out_specs=pl.BlockSpec((_TC, B_pad, F), lambda c: (c, 0, 0)),
        scratch_shapes=[pltpu.VMEM((B_pad, F), jnp.float32)],
        compiler_params=pltpu.CompilerParams(
            dimension_semantics=("arbitrary",)),
    )(dt, s0, W1, b1, W2, b2)

    # (T_pad, B_pad, F) -> (B, T, 2): first D features of s are y; module
    # returns only the first 2. Tiny slice + permute in the jitted wrapper.
    return jnp.transpose(sol[:T, :B, :2], (1, 0, 2))


cs_neural_ode_forward = jax.jit(_forward_impl, static_argnums=(3,))


def _reference(y0, t, params):
    """Pure-JAX reference of the same solver semantics (unfused weights)."""
    w1f, b1f, w2f, b2f, w1g, b1g, w2g, b2g = params

    def mlp(x, w1, b1, w2, b2):
        return jnp.tanh(x @ w1 + b1) @ w2 + b2

    ys = [y0]
    y, u = y0, y0
    for i in range(1, t.shape[0]):
        dt = t[i] - t[i - 1]
        udot = mlp(u, w1g, b1g, w2g, b2g)
        f = mlp(y, w1f, b1f, w2f, b2f) + udot
        y = y + dt * f
        u = u + dt * udot
        ys.append(y)
    sol = jnp.stack(ys)                      # (T, B, D)
    return jnp.transpose(sol, (1, 0, 2))[..., :2]


def _init_params(key, input_dim, hidden):
    ks = jax.random.split(key, 8)
    scale = 0.1
    w1f = scale * jax.random.normal(ks[0], (input_dim, hidden), jnp.float32)
    b1f = scale * jax.random.normal(ks[1], (1, hidden), jnp.float32)
    w2f = scale * jax.random.normal(ks[2], (hidden, input_dim), jnp.float32)
    b2f = scale * jax.random.normal(ks[3], (1, input_dim), jnp.float32)
    w1g = scale * jax.random.normal(ks[4], (input_dim, hidden), jnp.float32)
    b1g = scale * jax.random.normal(ks[5], (1, hidden), jnp.float32)
    w2g = scale * jax.random.normal(ks[6], (hidden, input_dim), jnp.float32)
    b2g = scale * jax.random.normal(ks[7], (1, input_dim), jnp.float32)
    return (w1f, b1f, w2f, b2f, w1g, b1g, w2g, b2g)


if __name__ == "__main__":
    B, D, H, T = 2, 4, 32, 8          # batch, input_dim, hidden, time points

    key = jax.random.PRNGKey(0)
    kp, ky = jax.random.split(key)
    params = _init_params(kp, D, H)
    y0 = jax.random.normal(ky, (B, D), jnp.float32)
    t = jnp.linspace(0.0, 1.0, T, dtype=jnp.float32)

    # Fuse + pad weights once; reuse across calls (and inside jit).
    fused = jax.tree_util.tree_map(jax.block_until_ready, fuse_params(params))

    out = cs_neural_ode_forward(y0, t, fused, D)
    out = jax.block_until_ready(out)

    ref = _reference(y0, t, params)
    assert out.shape == (B, T, 2), out.shape
    assert jnp.allclose(out, ref, rtol=1e-4, atol=1e-5), (
        f"max abs err {jnp.max(jnp.abs(out - ref))}")

    print("KERNEL_OK")
</pallas_src>

<mosaic_0001>
module attributes {stable_mosaic.version = 11 : i64} {
  func.func @_ode_kernel(%arg0: i32, %arg1: memref<8xf32, #tpu.memory_space<smem>>, %arg2: memref<8x128xf32, #tpu.memory_space<vmem>>, %arg3: memref<128x128xf32, #tpu.memory_space<vmem>>, %arg4: memref<1x128xf32, #tpu.memory_space<vmem>>, %arg5: memref<128x128xf32, #tpu.memory_space<vmem>>, %arg6: memref<1x128xf32, #tpu.memory_space<vmem>>, %arg7: memref<8x8x128xf32, #tpu.memory_space<vmem>>, %arg8: memref<8x128xf32, #tpu.memory_space<vmem>>) attributes {dimension_semantics = [#tpu.dimension_semantics<arbitrary>], iteration_bounds = array<i64: 1>, scalar_prefetch = 0 : i64, scratch_operands = 1 : i64, tpu.core_type = #tpu.core_type<tc>, window_params = [{transform_indices = @transform_0, window_bounds = array<i64: 8>}, {pipeline_mode = #tpu.pipeline_mode<synchronous>, transform_indices = @transform_1, window_bounds = array<i64: 8, 128>}, {pipeline_mode = #tpu.pipeline_mode<synchronous>, transform_indices = @transform_2, window_bounds = array<i64: 128, 128>}, {pipeline_mode = #tpu.pipeline_mode<synchronous>, transform_indices = @transform_3, window_bounds = array<i64: 1, 128>}, {pipeline_mode = #tpu.pipeline_mode<synchronous>, transform_indices = @transform_4, window_bounds = array<i64: 128, 128>}, {pipeline_mode = #tpu.pipeline_mode<synchronous>, transform_indices = @transform_5, window_bounds = array<i64: 1, 128>}, {transform_indices = @transform_6, window_bounds = array<i64: 8, 8, 128>}]} {
    %c0_i32 = arith.constant 0 : i32
    %0 = arith.cmpi eq, %arg0, %c0_i32 : i32
    %1 = arith.extui %0 : i1 to i32
    %c0_i32_0 = arith.constant 0 : i32
    %2 = arith.cmpi ne, %1, %c0_i32_0 : i32
    scf.if %2 {
      %c0_45 = arith.constant 0 : index
      %c0_46 = arith.constant 0 : index
      %126 = vector.load %arg2[%c0_45, %c0_46] : memref<8x128xf32, #tpu.memory_space<vmem>>, vector<8x128xf32>
      %c0_47 = arith.constant 0 : index
      %c0_48 = arith.constant 0 : index
      %127 = vector.load %arg8[%c0_47, %c0_48] : memref<8x128xf32, #tpu.memory_space<vmem>>, vector<8x128xf32>
      tpu.vector_store %arg8[%c0_47, %c0_48], %126 {strides = array<i32>} : memref<8x128xf32, #tpu.memory_space<vmem>>, vector<8x128xf32>,
    } else {
    }
    %c0 = arith.constant 0 : index
    %c0_1 = arith.constant 0 : index
    %3 = vector.load %arg3[%c0, %c0_1] : memref<128x128xf32, #tpu.memory_space<vmem>>, vector<128x128xf32>
    %c0_2 = arith.constant 0 : index
    %c0_3 = arith.constant 0 : index
    %4 = vector.load %arg5[%c0_2, %c0_3] : memref<128x128xf32, #tpu.memory_space<vmem>>, vector<128x128xf32>
    %c0_4 = arith.constant 0 : index
    %c0_5 = arith.constant 0 : index
    %5 = vector.load %arg4[%c0_4, %c0_5] : memref<1x128xf32, #tpu.memory_space<vmem>>, vector<1x128xf32>
    %6 = vector.shape_cast %5 : vector<1x128xf32> to vector<1x128xf32>
    %7 = vector.broadcast %6 : vector<1x128xf32> to vector<8x128xf32>
    %c0_6 = arith.constant 0 : index
    %c0_7 = arith.constant 0 : index
    %8 = vector.load %arg6[%c0_6, %c0_7] : memref<1x128xf32, #tpu.memory_space<vmem>>, vector<1x128xf32>
    %9 = vector.shape_cast %8 : vector<1x128xf32> to vector<1x128xf32>
    %10 = vector.broadcast %9 : vector<1x128xf32> to vector<8x128xf32>
    %c0_8 = arith.constant 0 : index
    %c0_9 = arith.constant 0 : index
    %11 = vector.load %arg8[%c0_8, %c0_9] : memref<8x128xf32, #tpu.memory_space<vmem>>, vector<8x128xf32>
    %c8_i32 = arith.constant 8 : i32
    %12 = arith.muli %arg0, %c8_i32 : i32
    %c0_i32_10 = arith.constant 0 : i32
    %13 = arith.addi %12, %c0_i32_10 : i32
    %14 = arith.index_cast %13 : i32 to index
    %15 = memref.load %arg1[%14] : memref<8xf32, #tpu.memory_space<smem>>
    %cst = arith.constant dense<0.000000e+00> : vector<8x128xf32>
    %16 = tpu.matmul %11, %3, %cst {dimension_numbers = #tpu.dot_dimension_numbers<[1], [0], [0], [1], [0, 0, 1, 1], [], []>} : vector<8x128xf32>, vector<128x128xf32>, vector<8x128xf32> -> vector<8x128xf32>
    %17 = arith.addf %16, %7 : vector<8x128xf32>
    %18 = math.tanh %17 : vector<8x128xf32>
    %cst_11 = arith.constant dense<0.000000e+00> : vector<8x128xf32>
    %19 = tpu.matmul %18, %4, %cst_11 {dimension_numbers = #tpu.dot_dimension_numbers<[1], [0], [0], [1], [0, 0, 1, 1], [], []>} : vector<8x128xf32>, vector<128x128xf32>, vector<8x128xf32> -> vector<8x128xf32>
    %20 = arith.addf %19, %10 : vector<8x128xf32>
    %21 = vector.broadcast %15 : f32 to vector<8x128xf32>
    %22 = arith.mulf %21, %20 : vector<8x128xf32>
    %23 = arith.addf %11, %22 : vector<8x128xf32>
    %c0_12 = arith.constant 0 : index
    %c0_13 = arith.constant 0 : index
    %c0_14 = arith.constant 0 : index
    %24 = vector.load %arg7[%c0_12, %c0_13, %c0_14] : memref<8x8x128xf32, #tpu.memory_space<vmem>>, vector<1x8x128xf32>
    %25 = vector.shape_cast %24 : vector<1x8x128xf32> to vector<8x128xf32>
    %26 = vector.shape_cast %23 : vector<8x128xf32> to vector<1x8x128xf32>
    tpu.vector_store %arg7[%c0_12, %c0_13, %c0_14], %26 {strides = array<i32>} : memref<8x8x128xf32, #tpu.memory_space<vmem>>, vector<1x8x128xf32>,
    %c1_i32 = arith.constant 1 : i32
    %27 = arith.addi %12, %c1_i32 : i32
    %28 = arith.index_cast %27 : i32 to index
    %29 = memref.load %arg1[%28] : memref<8xf32, #tpu.memory_space<smem>>
    %cst_15 = arith.constant dense<0.000000e+00> : vector<8x128xf32>
    %30 = tpu.matmul %23, %3, %cst_15 {dimension_numbers = #tpu.dot_dimension_numbers<[1], [0], [0], [1], [0, 0, 1, 1], [], []>} : vector<8x128xf32>, vector<128x128xf32>, vector<8x128xf32> -> vector<8x128xf32>
    %31 = arith.addf %30, %7 : vector<8x128xf32>
    %32 = math.tanh %31 : vector<8x128xf32>
    %cst_16 = arith.constant dense<0.000000e+00> : vector<8x128xf32>
    %33 = tpu.matmul %32, %4, %cst_16 {dimension_numbers = #tpu.dot_dimension_numbers<[1], [0], [0], [1], [0, 0, 1, 1], [], []>} : vector<8x128xf32>, vector<128x128xf32>, vector<8x128xf32> -> vector<8x128xf32>
    %34 = arith.addf %33, %10 : vector<8x128xf32>
    %35 = vector.broadcast %29 : f32 to vector<8x128xf32>
    %36 = arith.mulf %35, %34 : vector<8x128xf32>
    %37 = arith.addf %23, %36 : vector<8x128xf32>
    %c1 = arith.constant 1 : index
    %c0_17 = arith.constant 0 : index
    %c0_18 = arith.constant 0 : index
    %38 = vector.load %arg7[%c1, %c0_17, %c0_18] : memref<8x8x128xf32, #tpu.memory_space<vmem>>, vector<1x8x128xf32>
    %39 = vector.shape_cast %38 : vector<1x8x128xf32> to vector<8x128xf32>
    %40 = vector.shape_cast %37 : vector<8x128xf32> to vector<1x8x128xf32>
    tpu.vector_store %arg7[%c1, %c0_17, %c0_18], %40 {strides = array<i32>} : memref<8x8x128xf32, #tpu.memory_space<vmem>>, vector<1x8x128xf32>,
    %c2_i32 = arith.constant 2 : i32
    %41 = arith.addi %12, %c2_i32 : i32
    %42 = arith.index_cast %41 : i32 to index
    %43 = memref.load %arg1[%42] : memref<8xf32, #tpu.memory_space<smem>>
    %cst_19 = arith.constant dense<0.000000e+00> : vector<8x128xf32>
    %44 = tpu.matmul %37, %3, %cst_19 {dimension_numbers = #tpu.dot_dimension_numbers<[1], [0], [0], [1], [0, 0, 1, 1], [], []>} : vector<8x128xf32>, vector<128x128xf32>, vector<8x128xf32> -> vector<8x128xf32>
    %45 = arith.addf %44, %7 : vector<8x128xf32>
    %46 = math.tanh %45 : vector<8x128xf32>
    %cst_20 = arith.constant dense<0.000000e+00> : vector<8x128xf32>
    %47 = tpu.matmul %46, %4, %cst_20 {dimension_numbers = #tpu.dot_dimension_numbers<[1], [0], [0], [1], [0, 0, 1, 1], [], []>} : vector<8x128xf32>, vector<128x128xf32>, vector<8x128xf32> -> vector<8x128xf32>
    %48 = arith.addf %47, %10 : vector<8x128xf32>
    %49 = vector.broadcast %43 : f32 to vector<8x128xf32>
    %50 = arith.mulf %49, %48 : vector<8x128xf32>
    %51 = arith.addf %37, %50 : vector<8x128xf32>
    %c2 = arith.constant 2 : index
    %c0_21 = arith.constant 0 : index
    %c0_22 = arith.constant 0 : index
    %52 = vector.load %arg7[%c2, %c0_21, %c0_22] : memref<8x8x128xf32, #tpu.memory_space<vmem>>, vector<1x8x128xf32>
    %53 = vector.shape_cast %52 : vector<1x8x128xf32> to vector<8x128xf32>
    %54 = vector.shape_cast %51 : vector<8x128xf32> to vector<1x8x128xf32>
    tpu.vector_store %arg7[%c2, %c0_21, %c0_22], %54 {strides = array<i32>} : memref<8x8x128xf32, #tpu.memory_space<vmem>>, vector<1x8x128xf32>,
    %c3_i32 = arith.constant 3 : i32
    %55 = arith.addi %12, %c3_i32 : i32
    %56 = arith.index_cast %55 : i32 to index
    %57 = memref.load %arg1[%56] : memref<8xf32, #tpu.memory_space<smem>>
    %cst_23 = arith.constant dense<0.000000e+00> : vector<8x128xf32>
    %58 = tpu.matmul %51, %3, %cst_23 {dimension_numbers = #tpu.dot_dimension_numbers<[1], [0], [0], [1], [0, 0, 1, 1], [], []>} : vector<8x128xf32>, vector<128x128xf32>, vector<8x128xf32> -> vector<8x128xf32>
    %59 = arith.addf %58, %7 : vector<8x128xf32>
    %60 = math.tanh %59 : vector<8x128xf32>
    %cst_24 = arith.constant dense<0.000000e+00> : vector<8x128xf32>
    %61 = tpu.matmul %60, %4, %cst_24 {dimension_numbers = #tpu.dot_dimension_numbers<[1], [0], [0], [1], [0, 0, 1, 1], [], []>} : vector<8x128xf32>, vector<128x128xf32>, vector<8x128xf32> -> vector<8x128xf32>
    %62 = arith.addf %61, %10 : vector<8x128xf32>
    %63 = vector.broadcast %57 : f32 to vector<8x128xf32>
    %64 = arith.mulf %63, %62 : vector<8x128xf32>
    %65 = arith.addf %51, %64 : vector<8x128xf32>
    %c3 = arith.constant 3 : index
    %c0_25 = arith.constant 0 : index
    %c0_26 = arith.constant 0 : index
    %66 = vector.load %arg7[%c3, %c0_25, %c0_26] : memref<8x8x128xf32, #tpu.memory_space<vmem>>, vector<1x8x128xf32>
    %67 = vector.shape_cast %66 : vector<1x8x128xf32> to vector<8x128xf32>
    %68 = vector.shape_cast %65 : vector<8x128xf32> to vector<1x8x128xf32>
    tpu.vector_store %arg7[%c3, %c0_25, %c0_26], %68 {strides = array<i32>} : memref<8x8x128xf32, #tpu.memory_space<vmem>>, vector<1x8x128xf32>,
    %c4_i32 = arith.constant 4 : i32
    %69 = arith.addi %12, %c4_i32 : i32
    %70 = arith.index_cast %69 : i32 to index
    %71 = memref.load %arg1[%70] : memref<8xf32, #tpu.memory_space<smem>>
    %cst_27 = arith.constant dense<0.000000e+00> : vector<8x128xf32>
    %72 = tpu.matmul %65, %3, %cst_27 {dimension_numbers = #tpu.dot_dimension_numbers<[1], [0], [0], [1], [0, 0, 1, 1], [], []>} : vector<8x128xf32>, vector<128x128xf32>, vector<8x128xf32> -> vector<8x128xf32>
    %73 = arith.addf %72, %7 : vector<8x128xf32>
    %74 = math.tanh %73 : vector<8x128xf32>
    %cst_28 = arith.constant dense<0.000000e+00> : vector<8x128xf32>
    %75 = tpu.matmul %74, %4, %cst_28 {dimension_numbers = #tpu.dot_dimension_numbers<[1], [0], [0], [1], [0, 0, 1, 1], [], []>} : vector<8x128xf32>, vector<128x128xf32>, vector<8x128xf32> -> vector<8x128xf32>
    %76 = arith.addf %75, %10 : vector<8x128xf32>
    %77 = vector.broadcast %71 : f32 to vector<8x128xf32>
    %78 = arith.mulf %77, %76 : vector<8x128xf32>
    %79 = arith.addf %65, %78 : vector<8x128xf32>
    %c4 = arith.constant 4 : index
    %c0_29 = arith.constant 0 : index
    %c0_30 = arith.constant 0 : index
    %80 = vector.load %arg7[%c4, %c0_29, %c0_30] : memref<8x8x128xf32, #tpu.memory_space<vmem>>, vector<1x8x128xf32>
    %81 = vector.shape_cast %80 : vector<1x8x128xf32> to vector<8x128xf32>
    %82 = vector.shape_cast %79 : vector<8x128xf32> to vector<1x8x128xf32>
    tpu.vector_store %arg7[%c4, %c0_29, %c0_30], %82 {strides = array<i32>} : memref<8x8x128xf32, #tpu.memory_space<vmem>>, vector<1x8x128xf32>,
    %c5_i32 = arith.constant 5 : i32
    %83 = arith.addi %12, %c5_i32 : i32
    %84 = arith.index_cast %83 : i32 to index
    %85 = memref.load %arg1[%84] : memref<8xf32, #tpu.memory_space<smem>>
    %cst_31 = arith.constant dense<0.000000e+00> : vector<8x128xf32>
    %86 = tpu.matmul %79, %3, %cst_31 {dimension_numbers = #tpu.dot_dimension_numbers<[1], [0], [0], [1], [0, 0, 1, 1], [], []>} : vector<8x128xf32>, vector<128x128xf32>, vector<8x128xf32> -> vector<8x128xf32>
    %87 = arith.addf %86, %7 : vector<8x128xf32>
    %88 = math.tanh %87 : vector<8x128xf32>
    %cst_32 = arith.constant dense<0.000000e+00> : vector<8x128xf32>
    %89 = tpu.matmul %88, %4, %cst_32 {dimension_numbers = #tpu.dot_dimension_numbers<[1], [0], [0], [1], [0, 0, 1, 1], [], []>} : vector<8x128xf32>, vector<128x128xf32>, vector<8x128xf32> -> vector<8x128xf32>
    %90 = arith.addf %89, %10 : vector<8x128xf32>
    %91 = vector.broadcast %85 : f32 to vector<8x128xf32>
    %92 = arith.mulf %91, %90 : vector<8x128xf32>
    %93 = arith.addf %79, %92 : vector<8x128xf32>
    %c5 = arith.constant 5 : index
    %c0_33 = arith.constant 0 : index
    %c0_34 = arith.constant 0 : index
    %94 = vector.load %arg7[%c5, %c0_33, %c0_34] : memref<8x8x128xf32, #tpu.memory_space<vmem>>, vector<1x8x128xf32>
    %95 = vector.shape_cast %94 : vector<1x8x128xf32> to vector<8x128xf32>
    %96 = vector.shape_cast %93 : vector<8x128xf32> to vector<1x8x128xf32>
    tpu.vector_store %arg7[%c5, %c0_33, %c0_34], %96 {strides = array<i32>} : memref<8x8x128xf32, #tpu.memory_space<vmem>>, vector<1x8x128xf32>,
    %c6_i32 = arith.constant 6 : i32
    %97 = arith.addi %12, %c6_i32 : i32
    %98 = arith.index_cast %97 : i32 to index
    %99 = memref.load %arg1[%98] : memref<8xf32, #tpu.memory_space<smem>>
    %cst_35 = arith.constant dense<0.000000e+00> : vector<8x128xf32>
    %100 = tpu.matmul %93, %3, %cst_35 {dimension_numbers = #tpu.dot_dimension_numbers<[1], [0], [0], [1], [0, 0, 1, 1], [], []>} : vector<8x128xf32>, vector<128x128xf32>, vector<8x128xf32> -> vector<8x128xf32>
    %101 = arith.addf %100, %7 : vector<8x128xf32>
    %102 = math.tanh %101 : vector<8x128xf32>
    %cst_36 = arith.constant dense<0.000000e+00> : vector<8x128xf32>
    %103 = tpu.matmul %102, %4, %cst_36 {dimension_numbers = #tpu.dot_dimension_numbers<[1], [0], [0], [1], [0, 0, 1, 1], [], []>} : vector<8x128xf32>, vector<128x128xf32>, vector<8x128xf32> -> vector<8x128xf32>
    %104 = arith.addf %103, %10 : vector<8x128xf32>
    %105 = vector.broadcast %99 : f32 to vector<8x128xf32>
    %106 = arith.mulf %105, %104 : vector<8x128xf32>
    %107 = arith.addf %93, %106 : vector<8x128xf32>
    %c6 = arith.constant 6 : index
    %c0_37 = arith.constant 0 : index
    %c0_38 = arith.constant 0 : index
    %108 = vector.load %arg7[%c6, %c0_37, %c0_38] : memref<8x8x128xf32, #tpu.memory_space<vmem>>, vector<1x8x128xf32>
    %109 = vector.shape_cast %108 : vector<1x8x128xf32> to vector<8x128xf32>
    %110 = vector.shape_cast %107 : vector<8x128xf32> to vector<1x8x128xf32>
    tpu.vector_store %arg7[%c6, %c0_37, %c0_38], %110 {strides = array<i32>} : memref<8x8x128xf32, #tpu.memory_space<vmem>>, vector<1x8x128xf32>,
    %c7_i32 = arith.constant 7 : i32
    %111 = arith.addi %12, %c7_i32 : i32
    %112 = arith.index_cast %111 : i32 to index
    %113 = memref.load %arg1[%112] : memref<8xf32, #tpu.memory_space<smem>>
    %cst_39 = arith.constant dense<0.000000e+00> : vector<8x128xf32>
    %114 = tpu.matmul %107, %3, %cst_39 {dimension_numbers = #tpu.dot_dimension_numbers<[1], [0], [0], [1], [0, 0, 1, 1], [], []>} : vector<8x128xf32>, vector<128x128xf32>, vector<8x128xf32> -> vector<8x128xf32>
    %115 = arith.addf %114, %7 : vector<8x128xf32>
    %116 = math.tanh %115 : vector<8x128xf32>
    %cst_40 = arith.constant dense<0.000000e+00> : vector<8x128xf32>
    %117 = tpu.matmul %116, %4, %cst_40 {dimension_numbers = #tpu.dot_dimension_numbers<[1], [0], [0], [1], [0, 0, 1, 1], [], []>} : vector<8x128xf32>, vector<128x128xf32>, vector<8x128xf32> -> vector<8x128xf32>
    %118 = arith.addf %117, %10 : vector<8x128xf32>
    %119 = vector.broadcast %113 : f32 to vector<8x128xf32>
    %120 = arith.mulf %119, %118 : vector<8x128xf32>
    %121 = arith.addf %107, %120 : vector<8x128xf32>
    %c7 = arith.constant 7 : index
    %c0_41 = arith.constant 0 : index
    %c0_42 = arith.constant 0 : index
    %122 = vector.load %arg7[%c7, %c0_41, %c0_42] : memref<8x8x128xf32, #tpu.memory_space<vmem>>, vector<1x8x128xf32>
    %123 = vector.shape_cast %122 : vector<1x8x128xf32> to vector<8x128xf32>
    %124 = vector.shape_cast %121 : vector<8x128xf32> to vector<1x8x128xf32>
    tpu.vector_store %arg7[%c7, %c0_41, %c0_42], %124 {strides = array<i32>} : memref<8x8x128xf32, #tpu.memory_space<vmem>>, vector<1x8x128xf32>,
    %c0_43 = arith.constant 0 : index
    %c0_44 = arith.constant 0 : index
    %125 = vector.load %arg8[%c0_43, %c0_44] : memref<8x128xf32, #tpu.memory_space<vmem>>, vector<8x128xf32>
    tpu.vector_store %arg8[%c0_43, %c0_44], %121 {strides = array<i32>} : memref<8x128xf32, #tpu.memory_space<vmem>>, vector<8x128xf32>,
    return
  }
  func.func @transform_0(%arg0: i32) -> i32 {
    %c0_i32 = arith.constant 0 : i32
    %c0_i32_0 = arith.constant 0 : i32
    return %c0_i32 : i32
  }
  func.func @transform_1(%arg0: i32) -> (i32, i32) {
    %c0_i32 = arith.constant 0 : i32
    %c0_i32_0 = arith.constant 0 : i32
    %c0_i32_1 = arith.constant 0 : i32
    return %c0_i32, %c0_i32_0 : i32, i32
  }
  func.func @transform_2(%arg0: i32) -> (i32, i32) {
    %c0_i32 = arith.constant 0 : i32
    %c0_i32_0 = arith.constant 0 : i32
    %c0_i32_1 = arith.constant 0 : i32
    return %c0_i32, %c0_i32_0 : i32, i32
  }
  func.func @transform_3(%arg0: i32) -> (i32, i32) {
    %c0_i32 = arith.constant 0 : i32
    %c0_i32_0 = arith.constant 0 : i32
    %c0_i32_1 = arith.constant 0 : i32
    return %c0_i32, %c0_i32_0 : i32, i32
  }
  func.func @transform_4(%arg0: i32) -> (i32, i32) {
    %c0_i32 = arith.constant 0 : i32
    %c0_i32_0 = arith.constant 0 : i32
    %c0_i32_1 = arith.constant 0 : i32
    return %c0_i32, %c0_i32_0 : i32, i32
  }
  func.func @transform_5(%arg0: i32) -> (i32, i32) {
    %c0_i32 = arith.constant 0 : i32
    %c0_i32_0 = arith.constant 0 : i32
    %c0_i32_1 = arith.constant 0 : i32
    return %c0_i32, %c0_i32_0 : i32, i32
  }
  func.func @transform_6(%arg0: i32) -> (i32, i32, i32) {
    %c0_i32 = arith.constant 0 : i32
    %c0_i32_0 = arith.constant 0 : i32
    %c0_i32_1 = arith.constant 0 : i32
    return %arg0, %c0_i32, %c0_i32_0 : i32, i32, i32
  }
}

</mosaic_0001>

<bundles_post_ra>
// kernel: _forward_impl.1
= control target key start
LH: loop header
LB: loop body
LE: loop exit
PB: predicated region body
PF: predicated region fallthrough
CT: control target
= control target key end

     0   :  { %11 = vsyncpa [#allocation5], 0  ;;  %s3073_s0 = inlined_call_operand.vmem [shape: f32[8], index: 0, kind: input, shape index: {}]   ;;  %s3074_s1 = inlined_call_operand.vmem [shape: f32[8,128], index: 1, kind: input, shape index: {}]   ;;  %s3075_s2 = inlined_call_operand.hbm [shape: f32[128,128], index: 2, kind: input, shape index: {}]   ;;  %s3076_s3 = inlined_call_operand.vmem [shape: f32[1,128], index: 3, kind: input, shape index: {}]   ;;  %s3077_s4 = inlined_call_operand.hbm [shape: f32[128,128], index: 4, kind: input, shape index: {}]   ;;  %s3078_s5 = inlined_call_operand.vmem [shape: f32[1,128], index: 5, kind: input, shape index: {}]   ;;  %s3079_s6 = inlined_call_operand.vmem [shape: f32[8,8,128], index: 6, kind: output, shape index: {}]  }
   0x1   :  { %12 = vsyncpa [#allocation4], 0  ;;  %s20_s23 = sshll.u32 %s3073_s0, 4  ;;  %s21_s23 = int_to_ptr.vmem [resolvable:$true] %s20_s23 }
   0x2   :  { %13 = vsyncpa [#allocation8], 0  ;;  %s2564_s24 = scalar_lea.vmem %s21_s23, 16  ;;  %p2569_p1 = scmp.lt.s32.totalorder %s21_s23, %s21_s23 }
   0x3   :  { %p2565_p0 = scmp.ne.s32.totalorder %s21_s23, %s2564_s24  ;;  %p2570_p2 = scmp.lt.s32.totalorder %s2564_s24, %s2564_s24 }
   0x5   :  { %p2571_p3 = por %p2570_p2, %p2569_p1 }
   0x7   :  { %p2572_p4 = pnand %p2571_p3, %p2565_p0 }
   0x9   :  { %2575 = shalt.err (!%p2572_p4)
}
   0xa   :  { %s2626_s25 = smov [#allocation3]   ;;  %s2627_s26 = smov [#allocation6]  }
   0xb   :  { %23 = dma.vmem_to_smem %s21_s23, 16, %s2626_s25, [#allocation5]  }
   0xc   :  { %s31_s27 = sshll.u32 %s2627_s26, 4  ;;  %s2576_s30 = scalar_lea.hbm %s3075_s2, 2048  ;;  %s32_s27 = int_to_ptr.vmem [resolvable:$true] %s31_s27 }
   0xd   :  { %p2577_p5 = scmp.ne.s32.totalorder %s3075_s2, %s2576_s30  ;;  %p2580_p6 = scmp.lt.u32.totalorder %s2576_s30, %s3075_s2 }
   0xf   :  { %p2582_p7 = pnand %p2580_p6, %p2577_p5 }
  0x11   :  { %2585 = shalt.err (!%p2582_p7)
}
  0x12   :  { %s2586_s10 = scalar_lea.vmem %s32_s27, 2048  ;;  %p2591_p9 = scmp.lt.s32.totalorder %s32_s27, %s32_s27 }
  0x13   :  { %p2587_p8 = scmp.ne.s32.totalorder %s32_s27, %s2586_s10  ;;  %p2592_p10 = scmp.lt.s32.totalorder %s2586_s10, %s2586_s10 }
  0x15   :  { %p2593_p11 = por %p2592_p10, %p2591_p9 }
  0x17   :  { %p2594_p12 = pnand %p2593_p11, %p2587_p8 }
  0x19   :  { %2597 = shalt.err (!%p2594_p12)
}
  0x1a   :  { %s2628_s11 = smov 128   ;;  %s2629_s12 = smov 8  }
  0x1b   :  { %37 = dma.hbm_to_vmem [thread:$0]  %s3075_s2, 2048, %s32_s27, [#allocation4], %s2628_s11, %s2628_s11, %s2629_s12  }
  0x1c   :  { %s2630_s15 = smov [#allocation7]   ;;  %s2598_s19 = scalar_lea.hbm %s3077_s4, 2048 }
  0x1d   :  { %s45_s16 = sshll.u32 %s2630_s15, 4  ;;  %p2599_p13 = scmp.ne.s32.totalorder %s3077_s4, %s2598_s19  ;;  %s46_s16 = int_to_ptr.vmem [resolvable:$true] %s45_s16 }
  0x1e   :  { %p2602_p0 = scmp.lt.u32.totalorder %s2598_s19, %s3077_s4 }
  0x20   :  { %p2604_p1 = pnand %p2602_p0, %p2599_p13 }
  0x22   :  { %2607 = shalt.err (!%p2604_p1)
}
  0x23   :  { %s2608_s24 = scalar_lea.vmem %s46_s16, 2048  ;;  %p2613_p3 = scmp.lt.s32.totalorder %s46_s16, %s46_s16 }
  0x24   :  { %p2609_p2 = scmp.ne.s32.totalorder %s46_s16, %s2608_s24  ;;  %p2614_p4 = scmp.lt.s32.totalorder %s2608_s24, %s2608_s24 }
  0x26   :  { %p2615_p5 = por %p2614_p4, %p2613_p3 }
  0x28   :  { %p2616_p6 = pnand %p2615_p5, %p2609_p2 }
  0x2a   :  { %2619 = shalt.err (!%p2616_p6)
}
  0x2b   :  { %51 = dma.hbm_to_vmem [thread:$0]  %s3077_s4, 2048, %s46_s16, [#allocation8], %s2628_s11, %s2628_s11, %s2629_s12  }
  0x2c   :  { %2620 = dma.done.wait [#allocation5], 16  }
  0x2d   :  { %2621 = vsyncadd [#allocation5], 4294967280 }
  0x2e   :  { %2622 = dma.done.wait [#allocation4], 2048  }
  0x2f   :  { %2623 = vsyncadd [#allocation4], 4294965248 }
  0x30   :  { %2624 = dma.done.wait [#allocation8], 2048  }
  0x31   :  { %2625 = vsyncadd [#allocation8], 4294965248 }
  0x32   :  { %63 = sfence }
  0x33   :  { %v70_v0 = vld [vmem:[#allocation6] sm:$0xff]  ;;  %v71_v1 = vld [vmem:[#allocation6 + $0x8] sm:$0xff]  ;;  %v72_v2 = vld [vmem:[#allocation6 + $0x10] sm:$0xff]  ;;  %v2631_v3 = vmov 0.0|0.0   ;;  %vm2632_vm0 = vmmov 0   ;;  %v2633_v6 = vmov 0.0  }
  0x34   :  { %2156 = vmatprep.subr.bf16.mxu0 %v2631_v3  ;;  %v2697_v4 = vpack.c.bf16 %v71_v1, %v70_v0  ;;  %v73_v5 = vld [vmem:[#allocation6 + $0x18] sm:$0xff]  ;;  %1628 = vmatprep.mubr.msk.f32.mxu0 %vm2632_vm0, %v2633_v6  ;;  %v74_v8 = vld [vmem:[#allocation6 + $0x20] sm:$0xff]  ;;  %v75_v9 = vld [vmem:[#allocation6 + $0x28] sm:$0xff]  ;;  %s1312_s9 = sld [smem:[#allocation3 + $0x2]]  ;;  %s1314_s12 = sld [smem:[#allocation3 + $0x3]] }
  0x35   :  { %2180 = vmatprep.subr.bf16.mxu1 %v2631_v3  ;;  %1663 = vmatprep.mubr.msk.f32.mxu1 %vm2632_vm0, %v2633_v6  ;;  %v2705_v7 = vpack.c.bf16 %v73_v5, %v72_v2  ;;  %v86_v10 = vld [vmem:[#allocation7] sm:$0xff]  ;;  %v87_v11 = vld [vmem:[#allocation7 + $0x8] sm:$0xff]  ;;  %v88_v12 = vld [vmem:[#allocation7 + $0x10] sm:$0xff]  ;;  %v2709_v14 = vpack.c.bf16 %v75_v9, %v74_v8  ;;  %s1316_s15 = sld [smem:[#allocation3 + $0x4]]  ;;  %s1318_s18 = sld [smem:[#allocation3 + $0x5]] }
  0x36   :  { %2158 = vmatpush3.bf16.msra.mxu0 %v2697_v4  ;;  %v89_v13 = vld [vmem:[#allocation7 + $0x18] sm:$0xff]  ;;  %v2711_v15 = vpack.c.bf16 %v87_v11, %v86_v10  ;;  %v76_v16 = vld [vmem:[#allocation6 + $0x30] sm:$0xff]  ;;  %v90_v19 = vld [vmem:[#allocation7 + $0x20] sm:$0xff]  ;;  %s1320_s21 = sld [smem:[#allocation3 + $0x6]]  ;;  %s1322_s24 = sld [smem:[#allocation3 + $0x7]] }
  0x37   :  { %2159 = vmatprep.subr.bf16.mxu0 %v2631_v3  ;;  %v77_v17 = vld [vmem:[#allocation6 + $0x38] sm:$0xff]  ;;  %v2715_v18 = vpack.c.bf16 %v89_v13, %v88_v12  ;;  %v91_v20 = vld [vmem:[#allocation7 + $0x28] sm:$0xff]  ;;  %v78_v22 = vld [vmem:[#allocation6 + $0x40] sm:$0xff] }
  0x38   :  { %2182 = vmatpush3.bf16.msra.mxu1 %v2711_v15  ;;  %v2719_v21 = vpack.c.bf16 %v77_v17, %v76_v16  ;;  %v79_v23 = vld [vmem:[#allocation6 + $0x48] sm:$0xff]  ;;  %v2723_v24 = vpack.c.bf16 %v91_v20, %v90_v19  ;;  %v92_v25 = vld [vmem:[#allocation7 + $0x30] sm:$0xff]  ;;  %v93_v26 = vld [vmem:[#allocation7 + $0x38] sm:$0xff] }
  0x39   :  { %2183 = vmatprep.subr.bf16.mxu1 %v2631_v3  ;;  %v2727_v27 = vpack.c.bf16 %v79_v23, %v78_v22  ;;  %v80_v28 = vld [vmem:[#allocation6 + $0x50] sm:$0xff]  ;;  %v81_v29 = vld [vmem:[#allocation6 + $0x58] sm:$0xff]  ;;  %v2731_v30 = vpack.c.bf16 %v93_v26, %v92_v25  ;;  %v94_v31 = vld [vmem:[#allocation7 + $0x40] sm:$0xff] }
  0x3a   :  { %2161 = vmatpush3.bf16.msra.mxu0 %v2705_v7  ;;  %v95_v32 = vld [vmem:[#allocation7 + $0x48] sm:$0xff]  ;;  %v2735_v33 = vpack.c.bf16 %v81_v29, %v80_v28  ;;  %v82_v34 = vld [vmem:[#allocation6 + $0x60] sm:$0xff]  ;;  %v84_v38 = vld [vmem:[#allocation6 + $0x70] sm:$0xff]  ;;  %v555_v22 = vstv %s1312_s9 }
  0x3b   :  { %2162 = vmatprep.subr.bf16.mxu0 %v2631_v3  ;;  %v83_v35 = vld [vmem:[#allocation6 + $0x68] sm:$0xff]  ;;  %v2739_v36 = vpack.c.bf16 %v95_v32, %v94_v31  ;;  %v85_v39 = vld [vmem:[#allocation6 + $0x78] sm:$0xff]  ;;  %v2756_v41 = vld [vmem:[%s3074_s1] sm:$0xff] }
  0x3c   :  { %2185 = vmatpush3.bf16.msra.mxu1 %v2715_v18  ;;  %v2743_v37 = vpack.c.bf16 %v83_v35, %v82_v34  ;;  %v2749_v40 = vpack.c.bf16 %v85_v39, %v84_v38  ;;  %v96_v42 = vld [vmem:[#allocation7 + $0x50] sm:$0xff]  ;;  %v97_v43 = vld [vmem:[#allocation7 + $0x58] sm:$0xff]  ;;  %v98_v45 = vld [vmem:[#allocation7 + $0x60] sm:$0xff]  ;;  %v703_v38 = vstv %s1314_s12 }
  0x3d   :  { %2186 = vmatprep.subr.bf16.mxu1 %v2631_v3  ;;  %v2778_v44 = vpack.c.bf16 %v97_v43, %v96_v42  ;;  %v99_v46 = vld [vmem:[#allocation7 + $0x68] sm:$0xff]  ;;  %v100_v48 = vld [vmem:[#allocation7 + $0x70] sm:$0xff]  ;;  %v101_v49 = vld [vmem:[#allocation7 + $0x78] sm:$0xff] }
  0x3e   :  { %2164 = vmatpush3.bf16.msra.mxu0 %v2709_v14  ;;  %v2782_v47 = vpack.c.bf16 %v99_v46, %v98_v45  ;;  %v2785_v50 = vpack.c.bf16 %v101_v49, %v100_v48  ;;  %v2793_v51 = vld [vmem:[%s3076_s3] ss:$0 sm:$0xff]  ;;  %s118_s3 = sld [smem:[#allocation3]] }
  0x3f   :  { %2165 = vmatprep.subr.bf16.mxu0 %v2631_v3  ;;  %v2817_v56 = vld [vmem:[%s3078_s5] ss:$0 sm:$0xff]  ;;  %s1310_s5 = sld [smem:[#allocation3 + $0x1]] }
  0x40   :  { %2188 = vmatpush3.bf16.msra.mxu1 %v2723_v24 }
  0x41   :  { %2189 = vmatprep.subr.bf16.mxu1 %v2631_v3 }
  0x42   :  { %2167 = vmatpush3.bf16.msra.mxu0 %v2719_v21 }
  0x43   :  { %2168 = vmatprep.subr.bf16.mxu0 %v2631_v3 }
  0x44   :  { %2191 = vmatpush3.bf16.msra.mxu1 %v2731_v30  ;;  %v260_v58 = vstv %s118_s3 }
  0x45   :  { %2192 = vmatprep.subr.bf16.mxu1 %v2631_v3  ;;  %v407_v8 = vstv %s1310_s5 }
  0x46   :  { %2170 = vmatpush3.bf16.msra.mxu0 %v2727_v27 }
  0x47   :  { %2171 = vmatprep.subr.bf16.mxu0 %v2631_v3 }
  0x48   :  { %2194 = vmatpush3.bf16.msra.mxu1 %v2739_v36 }
  0x49   :  { %2195 = vmatprep.subr.bf16.mxu1 %v2631_v3 }
  0x4a   :  { %2173 = vmatpush3.bf16.msra.mxu0 %v2735_v33 }
  0x4b   :  { %2174 = vmatprep.subr.bf16.mxu0 %v2631_v3 }
  0x4c   :  { %2197 = vmatpush3.bf16.msra.mxu1 %v2778_v44 }
  0x4d   :  { %2198 = vmatprep.subr.bf16.mxu1 %v2631_v3 }
  0x4e   :  { %2176 = vmatpush3.bf16.msra.mxu0 %v2743_v37 }
  0x4f   :  { %2177 = vmatprep.subr.bf16.mxu0 %v2631_v3 }
  0x50   :  { %2200 = vmatpush3.bf16.msra.mxu1 %v2782_v47 }
  0x51   :  { %2201 = vmatprep.subr.bf16.mxu1 %v2631_v3 }
  0x52   :  { %2179 = vmatpush3.bf16.msra.mxu0 %v2749_v40 }
  0x53   :  { %2204 = vmatprep.subr.bf16.mxu0 %v2631_v3 }
  0x54   :  { %2203 = vmatpush3.bf16.msra.mxu1 %v2785_v50 }
  0x55   :  { %1629 = vmatmul.mubr.f32.vlgmr.msra.gmra.mrb[0].mxu0 %v2756_v41  ;;  %2228 = vmatprep.subr.bf16.mxu1 %v2631_v3 }
  0x56   :  { %2206 = vmatpush3.bf16.msra.mxu0 %v2697_v4  ;;  %1698 = vmatprep.mubr.msk.f32.mxu0 %vm2632_vm0, %v2633_v6 }
  0x57   :  { %2207 = vmatprep.subr.bf16.mxu0 %v2631_v3 }
  0x5a   :  { %2209 = vmatpush3.bf16.msra.mxu0 %v2705_v7 }
  0x5b   :  { %2210 = vmatprep.subr.bf16.mxu0 %v2631_v3 }
  0x5e   :  { %2212 = vmatpush3.bf16.msra.mxu0 %v2709_v14 }
  0x5f   :  { %2213 = vmatprep.subr.bf16.mxu0 %v2631_v3 }
  0x62   :  { %2215 = vmatpush3.bf16.msra.mxu0 %v2719_v21 }
  0x63   :  { %2216 = vmatprep.subr.bf16.mxu0 %v2631_v3 }
  0x66   :  { %2218 = vmatpush3.bf16.msra.mxu0 %v2727_v27 }
  0x67   :  { %2219 = vmatprep.subr.bf16.mxu0 %v2631_v3 }
  0x6a   :  { %2221 = vmatpush3.bf16.msra.mxu0 %v2735_v33 }
  0x6b   :  { %2222 = vmatprep.subr.bf16.mxu0 %v2631_v3 }
  0x6e   :  { %2224 = vmatpush3.bf16.msra.mxu0 %v2743_v37 }
  0x6f   :  { %2225 = vmatprep.subr.bf16.mxu0 %v2631_v3 }
  0x72   :  { %2227 = vmatpush3.bf16.msra.mxu0 %v2749_v40 }
  0x73   :  { %2252 = vmatprep.subr.bf16.mxu0 %v2631_v3 }
 0x128   :  { %v185_v52 = vpop.f32.mrb[0].mxu0 }
 0x129   :  { %v186_v53 = vadd.f32 %v2793_v51, %v185_v52  ;;  %v1630_v54 = vpop.f32.mrb[1].mxu0 }
 0x12b   :  { %2548 = vtanh.f32 %v186_v53  ;;  %v851_v53 = vstv %s1316_s15 }
 0x135   :  { %v2549_v55 = vpop.eup %2548 }
 0x136   :  { %1664 = vmatmul.mubr.f32.vlgmr.msra.gmra.mrb[0].mxu1 %v2549_v55 }
 0x137   :  { %2230 = vmatpush3.bf16.msra.mxu1 %v2711_v15  ;;  %1733 = vmatprep.mubr.msk.f32.mxu1 %vm2632_vm0, %v2633_v6 }
 0x138   :  { %2231 = vmatprep.subr.bf16.mxu1 %v2631_v3 }
 0x13b   :  { %2233 = vmatpush3.bf16.msra.mxu1 %v2715_v18 }
 0x13c   :  { %2234 = vmatprep.subr.bf16.mxu1 %v2631_v3 }
 0x13f   :  { %2236 = vmatpush3.bf16.msra.mxu1 %v2723_v24 }
 0x140   :  { %2237 = vmatprep.subr.bf16.mxu1 %v2631_v3 }
 0x143   :  { %2239 = vmatpush3.bf16.msra.mxu1 %v2731_v30 }
 0x144   :  { %2240 = vmatprep.subr.bf16.mxu1 %v2631_v3 }
 0x147   :  { %2242 = vmatpush3.bf16.msra.mxu1 %v2739_v36 }
 0x148   :  { %2243 = vmatprep.subr.bf16.mxu1 %v2631_v3 }
 0x14b   :  { %2245 = vmatpush3.bf16.msra.mxu1 %v2778_v44 }
 0x14c   :  { %2246 = vmatprep.subr.bf16.mxu1 %v2631_v3 }
 0x14f   :  { %2248 = vmatpush3.bf16.msra.mxu1 %v2782_v47 }
 0x150   :  { %2249 = vmatprep.subr.bf16.mxu1 %v2631_v3 }
 0x153   :  { %2251 = vmatpush3.bf16.msra.mxu1 %v2785_v50 }
 0x154   :  { %2276 = vmatprep.subr.bf16.mxu1 %v2631_v3 }
 0x209   :  { %v256_v57 = vpop.f32.mrb[0].mxu1 }
 0x20a   :  { %v257_v59 = vadd.f32 %v2817_v56, %v256_v57  ;;  %v1665_v60 = vpop.f32.mrb[1].mxu1 }
 0x20c   :  { %v261_v61 = vmul.f32 %v260_v58, %v257_v59 }
 0x20e   :  { %v262_v62 = vadd.f32 %v261_v61, %v2756_v41 }
 0x210   :  { %263 = vst [vmem:[%s3079_s6] sm:$0xff] %v262_v62  ;;  %1699 = vmatmul.mubr.f32.vlgmr.msra.gmra.mrb[2].mxu0 %v262_v62 }
 0x211   :  { %2254 = vmatpush3.bf16.msra.mxu0 %v2697_v4  ;;  %1768 = vmatprep.mubr.msk.f32.mxu0 %vm2632_vm0, %v2633_v6 }
 0x212   :  { %2255 = vmatprep.subr.bf16.mxu0 %v2631_v3 }
 0x215   :  { %2257 = vmatpush3.bf16.msra.mxu0 %v2705_v7 }
 0x216   :  { %2258 = vmatprep.subr.bf16.mxu0 %v2631_v3 }
 0x219   :  { %2260 = vmatpush3.bf16.msra.mxu0 %v2709_v14 }
 0x21a   :  { %2261 = vmatprep.subr.bf16.mxu0 %v2631_v3 }
 0x21d   :  { %2263 = vmatpush3.bf16.msra.mxu0 %v2719_v21 }
 0x21e   :  { %2264 = vmatprep.subr.bf16.mxu0 %v2631_v3 }
 0x221   :  { %2266 = vmatpush3.bf16.msra.mxu0 %v2727_v27 }
 0x222   :  { %2267 = vmatprep.subr.bf16.mxu0 %v2631_v3 }
 0x225   :  { %2269 = vmatpush3.bf16.msra.mxu0 %v2735_v33 }
 0x226   :  { %2270 = vmatprep.subr.bf16.mxu0 %v2631_v3 }
 0x229   :  { %2272 = vmatpush3.bf16.msra.mxu0 %v2743_v37 }
 0x22a   :  { %2273 = vmatprep.subr.bf16.mxu0 %v2631_v3 }
 0x22d   :  { %2275 = vmatpush3.bf16.msra.mxu0 %v2749_v40 }
 0x22e   :  { %2300 = vmatprep.subr.bf16.mxu0 %v2631_v3 }
 0x2e3   :  { %v332_v63 = vpop.f32.mrb[2].mxu0 }
 0x2e4   :  { %v333_v0 = vadd.f32 %v2793_v51, %v332_v63  ;;  %v1700_v1 = vpop.f32.mrb[3].mxu0 }
 0x2e6   :  { %2550 = vtanh.f32 %v333_v0  ;;  %v999_v0 = vstv %s1318_s18 }
 0x2f0   :  { %v2551_v2 = vpop.eup %2550 }
 0x2f1   :  { %1734 = vmatmul.mubr.f32.vlgmr.msra.gmra.mrb[2].mxu1 %v2551_v2 }
 0x2f2   :  { %2278 = vmatpush3.bf16.msra.mxu1 %v2711_v15  ;;  %1803 = vmatprep.mubr.msk.f32.mxu1 %vm2632_vm0, %v2633_v6 }
 0x2f3   :  { %2279 = vmatprep.subr.bf16.mxu1 %v2631_v3 }
 0x2f6   :  { %2281 = vmatpush3.bf16.msra.mxu1 %v2715_v18 }
 0x2f7   :  { %2282 = vmatprep.subr.bf16.mxu1 %v2631_v3 }
 0x2fa   :  { %2284 = vmatpush3.bf16.msra.mxu1 %v2723_v24 }
 0x2fb   :  { %2285 = vmatprep.subr.bf16.mxu1 %v2631_v3 }
 0x2fe   :  { %2287 = vmatpush3.bf16.msra.mxu1 %v2731_v30 }
 0x2ff   :  { %2288 = vmatprep.subr.bf16.mxu1 %v2631_v3 }
 0x302   :  { %2290 = vmatpush3.bf16.msra.mxu1 %v2739_v36 }
 0x303   :  { %2291 = vmatprep.subr.bf16.mxu1 %v2631_v3 }
 0x306   :  { %2293 = vmatpush3.bf16.msra.mxu1 %v2778_v44 }
 0x307   :  { %2294 = vmatprep.subr.bf16.mxu1 %v2631_v3 }
 0x30a   :  { %2296 = vmatpush3.bf16.msra.mxu1 %v2782_v47 }
 0x30b   :  { %2297 = vmatprep.subr.bf16.mxu1 %v2631_v3 }
 0x30e   :  { %2299 = vmatpush3.bf16.msra.mxu1 %v2785_v50 }
 0x30f   :  { %2324 = vmatprep.subr.bf16.mxu1 %v2631_v3 }
 0x3c4   :  { %v403_v5 = vpop.f32.mrb[2].mxu1 }
 0x3c5   :  { %v404_v9 = vadd.f32 %v2817_v56, %v403_v5  ;;  %v1735_v10 = vpop.f32.mrb[3].mxu1 }
 0x3c7   :  { %v408_v11 = vmul.f32 %v407_v8, %v404_v9 }
 0x3c9   :  { %v409_v12 = vadd.f32 %v408_v11, %v262_v62 }
 0x3cb   :  { %1311 = vst [vmem:[%s3079_s6 + $0x8] sm:$0xff] %v409_v12  ;;  %1769 = vmatmul.mubr.f32.vlgmr.msra.gmra.mrb[4].mxu0 %v409_v12 }
 0x3cc   :  { %2302 = vmatpush3.bf16.msra.mxu0 %v2697_v4  ;;  %1838 = vmatprep.mubr.msk.f32.mxu0 %vm2632_vm0, %v2633_v6 }
 0x3cd   :  { %2303 = vmatprep.subr.bf16.mxu0 %v2631_v3 }
 0x3d0   :  { %2305 = vmatpush3.bf16.msra.mxu0 %v2705_v7 }
 0x3d1   :  { %2306 = vmatprep.subr.bf16.mxu0 %v2631_v3 }
 0x3d4   :  { %2308 = vmatpush3.bf16.msra.mxu0 %v2709_v14 }
 0x3d5   :  { %2309 = vmatprep.subr.bf16.mxu0 %v2631_v3 }
 0x3d8   :  { %2311 = vmatpush3.bf16.msra.mxu0 %v2719_v21 }
 0x3d9   :  { %2312 = vmatprep.subr.bf16.mxu0 %v2631_v3 }
 0x3dc   :  { %2314 = vmatpush3.bf16.msra.mxu0 %v2727_v27 }
 0x3dd   :  { %2315 = vmatprep.subr.bf16.mxu0 %v2631_v3 }
 0x3e0   :  { %2317 = vmatpush3.bf16.msra.mxu0 %v2735_v33 }
 0x3e1   :  { %2318 = vmatprep.subr.bf16.mxu0 %v2631_v3 }
 0x3e4   :  { %2320 = vmatpush3.bf16.msra.mxu0 %v2743_v37 }
 0x3e5   :  { %2321 = vmatprep.subr.bf16.mxu0 %v2631_v3 }
 0x3e8   :  { %2323 = vmatpush3.bf16.msra.mxu0 %v2749_v40 }
 0x3e9   :  { %2348 = vmatprep.subr.bf16.mxu0 %v2631_v3 }
 0x49e   :  { %v480_v13 = vpop.f32.mrb[4].mxu0 }
 0x49f   :  { %v481_v16 = vadd.f32 %v2793_v51, %v480_v13  ;;  %v1770_v17 = vpop.f32.mrb[5].mxu0 }
 0x4a1   :  { %2552 = vtanh.f32 %v481_v16 }
 0x4ab   :  { %v2553_v19 = vpop.eup %2552 }
 0x4ac   :  { %1804 = vmatmul.mubr.f32.vlgmr.msra.gmra.mrb[4].mxu1 %v2553_v19 }
 0x4ad   :  { %2326 = vmatpush3.bf16.msra.mxu1 %v2711_v15  ;;  %1873 = vmatprep.mubr.msk.f32.mxu1 %vm2632_vm0, %v2633_v6 }
 0x4ae   :  { %2327 = vmatprep.subr.bf16.mxu1 %v2631_v3 }
 0x4b1   :  { %2329 = vmatpush3.bf16.msra.mxu1 %v2715_v18 }
 0x4b2   :  { %2330 = vmatprep.subr.bf16.mxu1 %v2631_v3 }
 0x4b5   :  { %2332 = vmatpush3.bf16.msra.mxu1 %v2723_v24 }
 0x4b6   :  { %2333 = vmatprep.subr.bf16.mxu1 %v2631_v3 }
 0x4b9   :  { %2335 = vmatpush3.bf16.msra.mxu1 %v2731_v30 }
 0x4ba   :  { %2336 = vmatprep.subr.bf16.mxu1 %v2631_v3 }
 0x4bd   :  { %2338 = vmatpush3.bf16.msra.mxu1 %v2739_v36 }
 0x4be   :  { %2339 = vmatprep.subr.bf16.mxu1 %v2631_v3 }
 0x4c1   :  { %2341 = vmatpush3.bf16.msra.mxu1 %v2778_v44 }
 0x4c2   :  { %2342 = vmatprep.subr.bf16.mxu1 %v2631_v3 }
 0x4c5   :  { %2344 = vmatpush3.bf16.msra.mxu1 %v2782_v47 }
 0x4c6   :  { %2345 = vmatprep.subr.bf16.mxu1 %v2631_v3 }
 0x4c9   :  { %2347 = vmatpush3.bf16.msra.mxu1 %v2785_v50 }
 0x4ca   :  { %2372 = vmatprep.subr.bf16.mxu1 %v2631_v3 }
 0x57f   :  { %v551_v20 = vpop.f32.mrb[4].mxu1 }
 0x580   :  { %v552_v23 = vadd.f32 %v2817_v56, %v551_v20  ;;  %v1805_v25 = vpop.f32.mrb[5].mxu1 }
 0x582   :  { %v556_v26 = vmul.f32 %v555_v22, %v552_v23 }
 0x584   :  { %v557_v28 = vadd.f32 %v556_v26, %v409_v12 }
 0x586   :  { %1313 = vst [vmem:[%s3079_s6 + $0x10] sm:$0xff] %v557_v28  ;;  %1839 = vmatmul.mubr.f32.vlgmr.msra.gmra.mrb[6].mxu0 %v557_v28 }
 0x587   :  { %2350 = vmatpush3.bf16.msra.mxu0 %v2697_v4  ;;  %1908 = vmatprep.mubr.msk.f32.mxu0 %vm2632_vm0, %v2633_v6 }
 0x588   :  { %2351 = vmatprep.subr.bf16.mxu0 %v2631_v3 }
 0x58b   :  { %2353 = vmatpush3.bf16.msra.mxu0 %v2705_v7 }
 0x58c   :  { %2354 = vmatprep.subr.bf16.mxu0 %v2631_v3 }
 0x58f   :  { %2356 = vmatpush3.bf16.msra.mxu0 %v2709_v14 }
 0x590   :  { %2357 = vmatprep.subr.bf16.mxu0 %v2631_v3 }
 0x593   :  { %2359 = vmatpush3.bf16.msra.mxu0 %v2719_v21 }
 0x594   :  { %2360 = vmatprep.subr.bf16.mxu0 %v2631_v3 }
 0x597   :  { %2362 = vmatpush3.bf16.msra.mxu0 %v2727_v27 }
 0x598   :  { %2363 = vmatprep.subr.bf16.mxu0 %v2631_v3 }
 0x59b   :  { %2365 = vmatpush3.bf16.msra.mxu0 %v2735_v33 }
 0x59c   :  { %2366 = vmatprep.subr.bf16.mxu0 %v2631_v3 }
 0x59f   :  { %2368 = vmatpush3.bf16.msra.mxu0 %v2743_v37 }
 0x5a0   :  { %2369 = vmatprep.subr.bf16.mxu0 %v2631_v3 }
 0x5a3   :  { %2371 = vmatpush3.bf16.msra.mxu0 %v2749_v40 }
 0x5a4   :  { %2396 = vmatprep.subr.bf16.mxu0 %v2631_v3 }
 0x659   :  { %v628_v29 = vpop.f32.mrb[6].mxu0 }
 0x65a   :  { %v629_v31 = vadd.f32 %v2793_v51, %v628_v29  ;;  %v1840_v32 = vpop.f32.mrb[7].mxu0 }
 0x65c   :  { %2554 = vtanh.f32 %v629_v31 }
 0x666   :  { %v2555_v34 = vpop.eup %2554 }
 0x667   :  { %1874 = vmatmul.mubr.f32.vlgmr.msra.gmra.mrb[6].mxu1 %v2555_v34 }
 0x668   :  { %2374 = vmatpush3.bf16.msra.mxu1 %v2711_v15  ;;  %1943 = vmatprep.mubr.msk.f32.mxu1 %vm2632_vm0, %v2633_v6 }
 0x669   :  { %2375 = vmatprep.subr.bf16.mxu1 %v2631_v3 }
 0x66c   :  { %2377 = vmatpush3.bf16.msra.mxu1 %v2715_v18 }
 0x66d   :  { %2378 = vmatprep.subr.bf16.mxu1 %v2631_v3 }
 0x670   :  { %2380 = vmatpush3.bf16.msra.mxu1 %v2723_v24 }
 0x671   :  { %2381 = vmatprep.subr.bf16.mxu1 %v2631_v3 }
 0x674   :  { %2383 = vmatpush3.bf16.msra.mxu1 %v2731_v30 }
 0x675   :  { %2384 = vmatprep.subr.bf16.mxu1 %v2631_v3 }
 0x678   :  { %2386 = vmatpush3.bf16.msra.mxu1 %v2739_v36 }
 0x679   :  { %2387 = vmatprep.subr.bf16.mxu1 %v2631_v3 }
 0x67c   :  { %2389 = vmatpush3.bf16.msra.mxu1 %v2778_v44 }
 0x67d   :  { %2390 = vmatprep.subr.bf16.mxu1 %v2631_v3 }
 0x680   :  { %2392 = vmatpush3.bf16.msra.mxu1 %v2782_v47 }
 0x681   :  { %2393 = vmatprep.subr.bf16.mxu1 %v2631_v3 }
 0x684   :  { %2395 = vmatpush3.bf16.msra.mxu1 %v2785_v50 }
 0x685   :  { %2420 = vmatprep.subr.bf16.mxu1 %v2631_v3 }
 0x73a   :  { %v699_v35 = vpop.f32.mrb[6].mxu1 }
 0x73b   :  { %v700_v39 = vadd.f32 %v2817_v56, %v699_v35  ;;  %v1875_v41 = vpop.f32.mrb[7].mxu1 }
 0x73d   :  { %v704_v42 = vmul.f32 %v703_v38, %v700_v39 }
 0x73f   :  { %v705_v43 = vadd.f32 %v704_v42, %v557_v28 }
 0x741   :  { %1315 = vst [vmem:[%s3079_s6 + $0x18] sm:$0xff] %v705_v43  ;;  %1909 = vmatmul.mubr.f32.vlgmr.msra.gmra.mrb[8].mxu0 %v705_v43 }
 0x742   :  { %2398 = vmatpush3.bf16.msra.mxu0 %v2697_v4  ;;  %1978 = vmatprep.mubr.msk.f32.mxu0 %vm2632_vm0, %v2633_v6 }
 0x743   :  { %2399 = vmatprep.subr.bf16.mxu0 %v2631_v3 }
 0x746   :  { %2401 = vmatpush3.bf16.msra.mxu0 %v2705_v7 }
 0x747   :  { %2402 = vmatprep.subr.bf16.mxu0 %v2631_v3 }
 0x74a   :  { %2404 = vmatpush3.bf16.msra.mxu0 %v2709_v14 }
 0x74b   :  { %2405 = vmatprep.subr.bf16.mxu0 %v2631_v3 }
 0x74e   :  { %2407 = vmatpush3.bf16.msra.mxu0 %v2719_v21 }
 0x74f   :  { %2408 = vmatprep.subr.bf16.mxu0 %v2631_v3 }
 0x752   :  { %2410 = vmatpush3.bf16.msra.mxu0 %v2727_v27 }
 0x753   :  { %2411 = vmatprep.subr.bf16.mxu0 %v2631_v3 }
 0x756   :  { %2413 = vmatpush3.bf16.msra.mxu0 %v2735_v33 }
 0x757   :  { %2414 = vmatprep.subr.bf16.mxu0 %v2631_v3 }
 0x75a   :  { %2416 = vmatpush3.bf16.msra.mxu0 %v2743_v37 }
 0x75b   :  { %2417 = vmatprep.subr.bf16.mxu0 %v2631_v3 }
 0x75e   :  { %2419 = vmatpush3.bf16.msra.mxu0 %v2749_v40 }
 0x75f   :  { %2444 = vmatprep.subr.bf16.mxu0 %v2631_v3 }
 0x814   :  { %v776_v45 = vpop.f32.mrb[8].mxu0 }
 0x815   :  { %v777_v46 = vadd.f32 %v2793_v51, %v776_v45  ;;  %v1910_v48 = vpop.f32.mrb[9].mxu0 }
 0x817   :  { %2556 = vtanh.f32 %v777_v46 }
 0x821   :  { %v2557_v49 = vpop.eup %2556 }
 0x822   :  { %1944 = vmatmul.mubr.f32.vlgmr.msra.gmra.mrb[8].mxu1 %v2557_v49 }
 0x823   :  { %2422 = vmatpush3.bf16.msra.mxu1 %v2711_v15  ;;  %2013 = vmatprep.mubr.msk.f32.mxu1 %vm2632_vm0, %v2633_v6 }
 0x824   :  { %2423 = vmatprep.subr.bf16.mxu1 %v2631_v3 }
 0x827   :  { %2425 = vmatpush3.bf16.msra.mxu1 %v2715_v18 }
 0x828   :  { %2426 = vmatprep.subr.bf16.mxu1 %v2631_v3 }
 0x82b   :  { %2428 = vmatpush3.bf16.msra.mxu1 %v2723_v24 }
 0x82c   :  { %2429 = vmatprep.subr.bf16.mxu1 %v2631_v3 }
 0x82f   :  { %2431 = vmatpush3.bf16.msra.mxu1 %v2731_v30 }
 0x830   :  { %2432 = vmatprep.subr.bf16.mxu1 %v2631_v3 }
 0x833   :  { %2434 = vmatpush3.bf16.msra.mxu1 %v2739_v36 }
 0x834   :  { %2435 = vmatprep.subr.bf16.mxu1 %v2631_v3 }
 0x837   :  { %2437 = vmatpush3.bf16.msra.mxu1 %v2778_v44 }
 0x838   :  { %2438 = vmatprep.subr.bf16.mxu1 %v2631_v3 }
 0x83b   :  { %2440 = vmatpush3.bf16.msra.mxu1 %v2782_v47 }
 0x83c   :  { %2441 = vmatprep.subr.bf16.mxu1 %v2631_v3 }
 0x83f   :  { %2443 = vmatpush3.bf16.msra.mxu1 %v2785_v50 }
 0x840   :  { %2468 = vmatprep.subr.bf16.mxu1 %v2631_v3 }
 0x8f5   :  { %v847_v52 = vpop.f32.mrb[8].mxu1 }
 0x8f6   :  { %v848_v54 = vadd.f32 %v2817_v56, %v847_v52  ;;  %v1945_v55 = vpop.f32.mrb[9].mxu1 }
 0x8f8   :  { %v852_v57 = vmul.f32 %v851_v53, %v848_v54 }
 0x8fa   :  { %v853_v58 = vadd.f32 %v852_v57, %v705_v43 }
 0x8fc   :  { %1317 = vst [vmem:[%s3079_s6 + $0x20] sm:$0xff] %v853_v58  ;;  %1979 = vmatmul.mubr.f32.vlgmr.msra.gmra.mrb[10].mxu0 %v853_v58 }
 0x8fd   :  { %2446 = vmatpush3.bf16.msra.mxu0 %v2697_v4  ;;  %2048 = vmatprep.mubr.msk.f32.mxu0 %vm2632_vm0, %v2633_v6 }
 0x8fe   :  { %2447 = vmatprep.subr.bf16.mxu0 %v2631_v3 }
 0x901   :  { %2449 = vmatpush3.bf16.msra.mxu0 %v2705_v7 }
 0x902   :  { %2450 = vmatprep.subr.bf16.mxu0 %v2631_v3 }
 0x905   :  { %2452 = vmatpush3.bf16.msra.mxu0 %v2709_v14 }
 0x906   :  { %2453 = vmatprep.subr.bf16.mxu0 %v2631_v3 }
 0x909   :  { %2455 = vmatpush3.bf16.msra.mxu0 %v2719_v21 }
 0x90a   :  { %2456 = vmatprep.subr.bf16.mxu0 %v2631_v3 }
 0x90d   :  { %2458 = vmatpush3.bf16.msra.mxu0 %v2727_v27 }
 0x90e   :  { %2459 = vmatprep.subr.bf16.mxu0 %v2631_v3 }
 0x911   :  { %2461 = vmatpush3.bf16.msra.mxu0 %v2735_v33 }
 0x912   :  { %2462 = vmatprep.subr.bf16.mxu0 %v2631_v3 }
 0x915   :  { %2464 = vmatpush3.bf16.msra.mxu0 %v2743_v37 }
 0x916   :  { %2465 = vmatprep.subr.bf16.mxu0 %v2631_v3 }
 0x919   :  { %2467 = vmatpush3.bf16.msra.mxu0 %v2749_v40 }
 0x91a   :  { %2492 = vmatprep.subr.bf16.mxu0 %v2631_v3 }
 0x9cf   :  { %v924_v59 = vpop.f32.mrb[10].mxu0 }
 0x9d0   :  { %v925_v60 = vadd.f32 %v2793_v51, %v924_v59  ;;  %v1980_v61 = vpop.f32.mrb[11].mxu0 }
 0x9d2   :  { %2558 = vtanh.f32 %v925_v60 }
 0x9dc   :  { %v2559_v62 = vpop.eup %2558 }
 0x9dd   :  { %2014 = vmatmul.mubr.f32.vlgmr.msra.gmra.mrb[10].mxu1 %v2559_v62 }
 0x9de   :  { %2470 = vmatpush3.bf16.msra.mxu1 %v2711_v15  ;;  %2083 = vmatprep.mubr.msk.f32.mxu1 %vm2632_vm0, %v2633_v6 }
 0x9df   :  { %2471 = vmatprep.subr.bf16.mxu1 %v2631_v3 }
 0x9e2   :  { %2473 = vmatpush3.bf16.msra.mxu1 %v2715_v18 }
 0x9e3   :  { %2474 = vmatprep.subr.bf16.mxu1 %v2631_v3 }
 0x9e6   :  { %2476 = vmatpush3.bf16.msra.mxu1 %v2723_v24 }
 0x9e7   :  { %2477 = vmatprep.subr.bf16.mxu1 %v2631_v3 }
 0x9ea   :  { %2479 = vmatpush3.bf16.msra.mxu1 %v2731_v30 }
 0x9eb   :  { %2480 = vmatprep.subr.bf16.mxu1 %v2631_v3 }
 0x9ee   :  { %2482 = vmatpush3.bf16.msra.mxu1 %v2739_v36 }
 0x9ef   :  { %2483 = vmatprep.subr.bf16.mxu1 %v2631_v3 }
 0x9f2   :  { %2485 = vmatpush3.bf16.msra.mxu1 %v2778_v44 }
 0x9f3   :  { %2486 = vmatprep.subr.bf16.mxu1 %v2631_v3 }
 0x9f6   :  { %2488 = vmatpush3.bf16.msra.mxu1 %v2782_v47 }
 0x9f7   :  { %2489 = vmatprep.subr.bf16.mxu1 %v2631_v3 }
 0x9fa   :  { %2491 = vmatpush3.bf16.msra.mxu1 %v2785_v50 }
 0x9fb   :  { %2516 = vmatprep.subr.bf16.mxu1 %v2631_v3 }
 0xab0   :  { %v995_v63 = vpop.f32.mrb[10].mxu1 }
 0xab1   :  { %v996_v1 = vadd.f32 %v2817_v56, %v995_v63  ;;  %v2015_v2 = vpop.f32.mrb[11].mxu1 }
 0xab3   :  { %v1000_v5 = vmul.f32 %v999_v0, %v996_v1 }
 0xab5   :  { %v1001_v8 = vadd.f32 %v1000_v5, %v853_v58 }
 0xab7   :  { %1319 = vst [vmem:[%s3079_s6 + $0x28] sm:$0xff] %v1001_v8  ;;  %2049 = vmatmul.mubr.f32.vlgmr.msra.gmra.mrb[12].mxu0 %v1001_v8 }
 0xab8   :  { %2494 = vmatpush3.bf16.msra.mxu0 %v2697_v4  ;;  %2118 = vmatprep.mubr.msk.f32.mxu0 %vm2632_vm0, %v2633_v6 }
 0xab9   :  { %2495 = vmatprep.subr.bf16.mxu0 %v2631_v3 }
 0xabc   :  { %2497 = vmatpush3.bf16.msra.mxu0 %v2705_v7 }
 0xabd   :  { %2498 = vmatprep.subr.bf16.mxu0 %v2631_v3 }
 0xac0   :  { %2500 = vmatpush3.bf16.msra.mxu0 %v2709_v14 }
 0xac1   :  { %2501 = vmatprep.subr.bf16.mxu0 %v2631_v3 }
 0xac4   :  { %2503 = vmatpush3.bf16.msra.mxu0 %v2719_v21 }
 0xac5   :  { %2504 = vmatprep.subr.bf16.mxu0 %v2631_v3 }
 0xac8   :  { %2506 = vmatpush3.bf16.msra.mxu0 %v2727_v27 }
 0xac9   :  { %2507 = vmatprep.subr.bf16.mxu0 %v2631_v3 }
 0xacc   :  { %2509 = vmatpush3.bf16.msra.mxu0 %v2735_v33 }
 0xacd   :  { %2510 = vmatprep.subr.bf16.mxu0 %v2631_v3 }
 0xad0   :  { %2512 = vmatpush3.bf16.msra.mxu0 %v2743_v37 }
 0xad1   :  { %2513 = vmatprep.subr.bf16.mxu0 %v2631_v3 }
 0xad4   :  { %2515 = vmatpush3.bf16.msra.mxu0 %v2749_v40 }
 0xb8a   :  { %v1072_v4 = vpop.f32.mrb[12].mxu0 }
 0xb8b   :  { %v1073_v7 = vadd.f32 %v2793_v51, %v1072_v4  ;;  %v2050_v14 = vpop.f32.mrb[13].mxu0 }
 0xb8d   :  { %2560 = vtanh.f32 %v1073_v7 }
 0xb97   :  { %v2561_v21 = vpop.eup %2560 }
 0xb98   :  { %2084 = vmatmul.mubr.f32.vlgmr.msra.gmra.mrb[12].mxu1 %v2561_v21 }
 0xb99   :  { %2518 = vmatpush3.bf16.msra.mxu1 %v2711_v15  ;;  %2153 = vmatprep.mubr.msk.f32.mxu1 %vm2632_vm0, %v2633_v6  ;;  %v1147_v15 = vstv %s1320_s21 }
 0xb9a   :  { %2519 = vmatprep.subr.bf16.mxu1 %v2631_v3 }
 0xb9d   :  { %2521 = vmatpush3.bf16.msra.mxu1 %v2715_v18 }
 0xb9e   :  { %2522 = vmatprep.subr.bf16.mxu1 %v2631_v3 }
 0xba1   :  { %2524 = vmatpush3.bf16.msra.mxu1 %v2723_v24 }
 0xba2   :  { %2525 = vmatprep.subr.bf16.mxu1 %v2631_v3 }
 0xba5   :  { %2527 = vmatpush3.bf16.msra.mxu1 %v2731_v30 }
 0xba6   :  { %2528 = vmatprep.subr.bf16.mxu1 %v2631_v3 }
 0xba9   :  { %2530 = vmatpush3.bf16.msra.mxu1 %v2739_v36 }
 0xbaa   :  { %2531 = vmatprep.subr.bf16.mxu1 %v2631_v3 }
 0xbad   :  { %2533 = vmatpush3.bf16.msra.mxu1 %v2778_v44  ;;  %v1295_v44 = vstv %s1322_s24 }
 0xbae   :  { %2534 = vmatprep.subr.bf16.mxu1 %v2631_v3 }
 0xbb1   :  { %2536 = vmatpush3.bf16.msra.mxu1 %v2782_v47 }
 0xbb2   :  { %2537 = vmatprep.subr.bf16.mxu1 %v2631_v3 }
 0xbb5   :  { %2539 = vmatpush3.bf16.msra.mxu1 %v2785_v50 }
 0xc6b   :  { %v1143_v6 = vpop.f32.mrb[12].mxu1 }
 0xc6c   :  { %v1144_v18 = vadd.f32 %v2817_v56, %v1143_v6  ;;  %v2085_v24 = vpop.f32.mrb[13].mxu1 }
 0xc6e   :  { %v1148_v27 = vmul.f32 %v1147_v15, %v1144_v18 }
 0xc70   :  { %v1149_v30 = vadd.f32 %v1148_v27, %v1001_v8 }
 0xc72   :  { %1321 = vst [vmem:[%s3079_s6 + $0x30] sm:$0xff] %v1149_v30  ;;  %2119 = vmatmul.mubr.f32.vlgmr.msra.gmra.mrb[14].mxu0 %v1149_v30 }
 0xd45   :  { %v1220_v33 = vpop.f32.mrb[14].mxu0 }
 0xd46   :  { %v1221_v36 = vadd.f32 %v2793_v51, %v1220_v33  ;;  %v2120_v37 = vpop.f32.mrb[15].mxu0 }
 0xd48   :  { %2562 = vtanh.f32 %v1221_v36 }
 0xd52   :  { %v2563_v3 = vpop.eup %2562 }
 0xd53   :  { %2154 = vmatmul.mubr.f32.vlgmr.msra.gmra.mrb[14].mxu1 %v2563_v3 }
 0xe26   :  { %v1291_v40 = vpop.f32.mrb[14].mxu1 }
 0xe27   :  { %v1292_v47 = vadd.f32 %v2817_v56, %v1291_v40  ;;  %v2155_v50 = vpop.f32.mrb[15].mxu1 }
 0xe29   :  { %v1296_v9 = vmul.f32 %v1295_v44, %v1292_v47 }
 0xe2b   :  { %v1297_v10 = vadd.f32 %v1296_v9, %v1149_v30 }
 0xe2d   :  { %1323 = vst [vmem:[%s3079_s6 + $0x38] sm:$0xff] %v1297_v10 }
 0xe2e   :  { %1305 = vsyncpa [#allocation4], 1 }
 0xe2f   :  { %1306 = vsyncpa [#allocation8], 1 }
 0xe30   :  { %1307 = vsyncpa [#allocation5], 1 }

</bundles_post_ra>
